<compile_context>
chip_gen: v7x
topology: tpu7x:2x2x1
jax: 0.10.0
libtpu: 0.0.40
codegen_flags: <defaults>
</compile_context>

<pallas_src>
import functools

import jax
import jax.numpy as jnp
from jax.experimental import pallas as pl
from jax.experimental.pallas import tpu as pltpu

EPS = 1e-5


# --------------------------------------------------------------------------- #
# Kernels
# --------------------------------------------------------------------------- #
def conv1_ds_kernel(x_ref, w_ref, yd_ref, y1_ref, st_ref, *, Cout, precision):
    """Fused 1x1 conv1 + 1x1 downsample (shared LHS) + partial BN stats."""
    y = jnp.dot(x_ref[...], w_ref[...],
                preferred_element_type=jnp.float32, precision=precision)
    yd_ref[...] = y[:, :Cout].astype(yd_ref.dtype)     # downsample branch
    y1_ref[...] = y[:, Cout:].astype(y1_ref.dtype)     # conv1 branch
    s = jnp.sum(y, axis=0, keepdims=True)
    ss = jnp.sum(y * y, axis=0, keepdims=True)
    st_ref[...] = jnp.concatenate([s, ss], axis=0)[None]


def conv2_kernel(y1_ref, sb_ref, w2_ref, y2_ref, st_ref,
                 *, H, W, compute_dtype, precision):
    """bn1 + ReLU, then 3x3 conv (pad=1) as 9 accumulating taps, + BN stats."""
    Rt, Cmid = y1_ref.shape
    sb = sb_ref[...]                                    # (2, Cmid) f32
    a1 = jnp.maximum(y1_ref[...].astype(jnp.float32) * sb[0:1, :] + sb[1:2, :],
                     0.0)
    a1c = a1.astype(compute_dtype)

    # Narrow per-row (h, w) coordinates; masks broadcast across lanes.
    r = jax.lax.broadcasted_iota(jnp.int32, (Rt, 1), 0)
    h = (r // W) % H
    w = r % W

    acc = jnp.zeros((Rt, Cmid), jnp.float32)
    for dh in (-1, 0, 1):
        for dw in (-1, 0, 1):
            d = dh * W + dw                             # flattened row offset
            if d > 0:
                tap = jnp.concatenate(
                    [a1c[d:, :], jnp.zeros((d, Cmid), a1c.dtype)], axis=0)
            elif d < 0:
                tap = jnp.concatenate(
                    [jnp.zeros((-d, Cmid), a1c.dtype), a1c[:d, :]], axis=0)
            else:
                tap = a1c
            if (dh, dw) != (0, 0):
                valid = ((h + dh >= 0) & (h + dh < H) &
                         (w + dw >= 0) & (w + dw < W))
                tap = tap * valid.astype(tap.dtype)     # zero padding at edges
            acc = acc + jnp.dot(tap, w2_ref[3 * (dh + 1) + (dw + 1)],
                                preferred_element_type=jnp.float32,
                                precision=precision)

    y2_ref[...] = acc.astype(y2_ref.dtype)
    s = jnp.sum(acc, axis=0, keepdims=True)
    ss = jnp.sum(acc * acc, axis=0, keepdims=True)
    st_ref[...] = jnp.concatenate([s, ss], axis=0)[None]


def conv3_kernel(y2_ref, sb_ref, w3_ref, y3_ref, st_ref,
                 *, compute_dtype, precision):
    """bn2 + ReLU, then 1x1 expansion conv, + partial BN stats."""
    sb = sb_ref[...]                                    # (2, Cmid) f32
    a2 = jnp.maximum(y2_ref[...].astype(jnp.float32) * sb[0:1, :] + sb[1:2, :],
                     0.0)
    y3 = jnp.dot(a2.astype(compute_dtype), w3_ref[...],
                 preferred_element_type=jnp.float32, precision=precision)
    y3_ref[...] = y3.astype(y3_ref.dtype)
    s = jnp.sum(y3, axis=0, keepdims=True)
    ss = jnp.sum(y3 * y3, axis=0, keepdims=True)
    st_ref[...] = jnp.concatenate([s, ss], axis=0)[None]


def residual_kernel(y3_ref, yd_ref, sb_ref, o_ref):
    """bn3 + downsample-BN, residual add, final ReLU."""
    sb = sb_ref[...]                                    # (4, Cout) f32
    y = y3_ref[...].astype(jnp.float32) * sb[0:1, :] + sb[1:2, :]
    i = yd_ref[...].astype(jnp.float32) * sb[2:3, :] + sb[3:4, :]
    o_ref[...] = jnp.maximum(y + i, 0.0).astype(o_ref.dtype)


# --------------------------------------------------------------------------- #
# Host-side helpers (tiny JAX glue between the tiled passes)
# --------------------------------------------------------------------------- #
def _fold_bn(pstats, gamma, beta, count):
    """Reduce per-tile [sum; sumsq] partials -> packed (2, C) scale/shift."""
    tot = jnp.sum(pstats, axis=0)                       # (2, C) f32
    mean = tot[0] / count
    var = tot[1] / count - mean * mean                  # biased (training BN)
    scale = gamma.astype(jnp.float32) * jax.lax.rsqrt(var + EPS)
    shift = beta.astype(jnp.float32) - mean * scale
    return jnp.stack([scale, shift], axis=0)


def _vmem_limit_bytes():
    # ~3/4 of physical VMEM, capped: ~96 MiB on v5e/v6e (128 MiB phys),
    # ~48 MiB on v7x (64 MiB phys).  Conservative fallback if the query fails.
    try:
        cap = pltpu.get_tpu_info().vmem_capacity_bytes
    except Exception:
        cap = 64 * 1024 * 1024
    return int(max(32 * 1024 * 1024, min(cap * 3 // 4, 100 * 1024 * 1024)))


# --------------------------------------------------------------------------- #
# Wrapper
# --------------------------------------------------------------------------- #
def bottleneck_pallas(x_nchw, params, *, compute_dtype=jnp.bfloat16,
                      tile_rows=1024):
    """x_nchw: (N, Cin, H, W); params: OIHW conv weights + BN gamma/beta."""
    N, Cin, H, W = x_nchw.shape
    Cmid = params["w1"].shape[0]
    Cout = params["w3"].shape[0]
    R = N * H * W
    rows_img = H * W

    # Batch-image tiles (whole images per tile -> no conv2 halo needed).
    nb = max(1, min(N, tile_rows // rows_img))
    while N % nb:
        nb -= 1
    if nb < N and (nb * rows_img) % 8 != 0:
        nb = N  # TODO(synk): sub-image tiles need 8-row alignment + halos.
    Rt = nb * rows_img
    T = N // nb

    precision = (jax.lax.Precision.HIGHEST
                 if compute_dtype == jnp.float32 else None)
    io_dtype = compute_dtype
    count = float(R)

    # NCHW (module contract) -> (N*H*W, C) rows with channels on lanes.
    x2d = (jnp.transpose(x_nchw, (0, 2, 3, 1))
           .reshape(R, Cin).astype(compute_dtype))

    # Compact weights (no kron / banded inflation).
    w1d = jnp.concatenate([params["wd"][:, :, 0, 0].T,          # (Cin, Cout)
                           params["w1"][:, :, 0, 0].T], axis=1  # (Cin, Cmid)
                          ).astype(compute_dtype)               # (Cin, Cout+Cmid)
    w2t = jnp.stack([params["w2"][:, :, kh, kw].T
                     for kh in range(3) for kw in range(3)],
                    axis=0).astype(compute_dtype)               # (9, Cmid, Cmid)
    w3m = params["w3"][:, :, 0, 0].T.astype(compute_dtype)      # (Cmid, Cout)

    cparams = pltpu.CompilerParams(dimension_semantics=("parallel",),
                                   vmem_limit_bytes=_vmem_limit_bytes())

    # --- pass 1: conv1 + downsample (fused dot) + partial BN stats ----------
    yd_raw, y1_raw, ps1 = pl.pallas_call(
        functools.partial(conv1_ds_kernel, Cout=Cout, precision=precision),
        grid=(T,),
        in_specs=[pl.BlockSpec((Rt, Cin), lambda i: (i, 0)),
                  pl.BlockSpec((Cin, Cout + Cmid), lambda i: (0, 0))],
        out_specs=(pl.BlockSpec((Rt, Cout), lambda i: (i, 0)),
                   pl.BlockSpec((Rt, Cmid), lambda i: (i, 0)),
                   pl.BlockSpec((1, 2, Cout + Cmid), lambda i: (i, 0, 0))),
        out_shape=(jax.ShapeDtypeStruct((R, Cout), io_dtype),
                   jax.ShapeDtypeStruct((R, Cmid), io_dtype),
                   jax.ShapeDtypeStruct((T, 2, Cout + Cmid), jnp.float32)),
        compiler_params=cparams,
    )(x2d, w1d)

    sbd = _fold_bn(ps1[:, :, :Cout], params["gd"], params["bd"], count)
    sb1 = _fold_bn(ps1[:, :, Cout:], params["g1"], params["b1"], count)

    # --- pass 2: bn1 + ReLU, 3x3 conv (9 accumulating taps), BN stats -------
    y2_raw, ps2 = pl.pallas_call(
        functools.partial(conv2_kernel, H=H, W=W,
                          compute_dtype=compute_dtype, precision=precision),
        grid=(T,),
        in_specs=[pl.BlockSpec((Rt, Cmid), lambda i: (i, 0)),
                  pl.BlockSpec((2, Cmid), lambda i: (0, 0)),
                  pl.BlockSpec((9, Cmid, Cmid), lambda i: (0, 0, 0))],
        out_specs=(pl.BlockSpec((Rt, Cmid), lambda i: (i, 0)),
                   pl.BlockSpec((1, 2, Cmid), lambda i: (i, 0, 0))),
        out_shape=(jax.ShapeDtypeStruct((R, Cmid), io_dtype),
                   jax.ShapeDtypeStruct((T, 2, Cmid), jnp.float32)),
        compiler_params=cparams,
    )(y1_raw, sb1, w2t)

    sb2 = _fold_bn(ps2, params["g2"], params["b2"], count)

    # --- pass 3: bn2 + ReLU, 1x1 expansion conv, BN stats -------------------
    y3_raw, ps3 = pl.pallas_call(
        functools.partial(conv3_kernel, compute_dtype=compute_dtype,
                          precision=precision),
        grid=(T,),
        in_specs=[pl.BlockSpec((Rt, Cmid), lambda i: (i, 0)),
                  pl.BlockSpec((2, Cmid), lambda i: (0, 0)),
                  pl.BlockSpec((Cmid, Cout), lambda i: (0, 0))],
        out_specs=(pl.BlockSpec((Rt, Cout), lambda i: (i, 0)),
                   pl.BlockSpec((1, 2, Cout), lambda i: (i, 0, 0))),
        out_shape=(jax.ShapeDtypeStruct((R, Cout), io_dtype),
                   jax.ShapeDtypeStruct((T, 2, Cout), jnp.float32)),
        compiler_params=cparams,
    )(y2_raw, sb2, w3m)

    sb3 = _fold_bn(ps3, params["g3"], params["b3"], count)
    sb_fin = jnp.concatenate([sb3, sbd], axis=0)        # (4, Cout) packed

    # --- pass 4: bn3, downsample-BN, residual add, final ReLU ---------------
    out2d = pl.pallas_call(
        residual_kernel,
        grid=(T,),
        in_specs=[pl.BlockSpec((Rt, Cout), lambda i: (i, 0)),
                  pl.BlockSpec((Rt, Cout), lambda i: (i, 0)),
                  pl.BlockSpec((4, Cout), lambda i: (0, 0))],
        out_specs=pl.BlockSpec((Rt, Cout), lambda i: (i, 0)),
        out_shape=jax.ShapeDtypeStruct((R, Cout), jnp.float32),
        compiler_params=cparams,
    )(y3_raw, yd_raw, sb_fin)

    # Rows -> NHWC (contiguous reshape) -> NCHW (module contract).
    return jnp.transpose(out2d.reshape(N, H, W, Cout), (0, 3, 1, 2))


# ----------------------------- pure-JAX reference ---------------------------- #
def _conv(x, w, stride=1, padding=0):
    return jax.lax.conv_general_dilated(
        x, w, window_strides=(stride, stride),
        padding=[(padding, padding), (padding, padding)],
        dimension_numbers=("NCHW", "OIHW", "NCHW"),
        precision=jax.lax.Precision.HIGHEST)


def _bn(x, gamma, beta):
    mean = x.mean(axis=(0, 2, 3), keepdims=True)
    var = ((x - mean) ** 2).mean(axis=(0, 2, 3), keepdims=True)
    xn = (x - mean) / jnp.sqrt(var + EPS)
    return xn * gamma[None, :, None, None] + beta[None, :, None, None]


def bottleneck_ref(x, p):
    y = jax.nn.relu(_bn(_conv(x, p["w1"]), p["g1"], p["b1"]))
    y = jax.nn.relu(_bn(_conv(y, p["w2"], stride=1, padding=1), p["g2"], p["b2"]))
    y = _bn(_conv(y, p["w3"]), p["g3"], p["b3"])
    i = _bn(_conv(x, p["wd"]), p["gd"], p["bd"])
    return jax.nn.relu(y + i)


# ------------------------------------ main ----------------------------------- #
if __name__ == "__main__":
    # Module-consistent small shapes: in_channels=16, out_channels=8,
    # expansion=4 -> Cout=32, N=2, H=W=8, stride=1, downsample=True.
    N, Cin, Cmid, H, W = 2, 16, 8, 8, 8
    Cout = 4 * Cmid

    ks = jax.random.split(jax.random.PRNGKey(0), 13)
    params = {
        "w1": 0.1 * jax.random.normal(ks[0], (Cmid, Cin, 1, 1), jnp.float32),
        "g1": 1.0 + 0.1 * jax.random.normal(ks[1], (Cmid,), jnp.float32),
        "b1": 0.1 * jax.random.normal(ks[2], (Cmid,), jnp.float32),
        "w2": 0.1 * jax.random.normal(ks[3], (Cmid, Cmid, 3, 3), jnp.float32),
        "g2": 1.0 + 0.1 * jax.random.normal(ks[4], (Cmid,), jnp.float32),
        "b2": 0.1 * jax.random.normal(ks[5], (Cmid,), jnp.float32),
        "w3": 0.1 * jax.random.normal(ks[6], (Cout, Cmid, 1, 1), jnp.float32),
        "g3": 1.0 + 0.1 * jax.random.normal(ks[7], (Cout,), jnp.float32),
        "b3": 0.1 * jax.random.normal(ks[8], (Cout,), jnp.float32),
        "wd": 0.1 * jax.random.normal(ks[9], (Cout, Cin, 1, 1), jnp.float32),
        "gd": 1.0 + 0.1 * jax.random.normal(ks[10], (Cout,), jnp.float32),
        "bd": 0.1 * jax.random.normal(ks[11], (Cout,), jnp.float32),
    }
    x = jax.random.normal(ks[12], (N, Cin, H, W), jnp.float32)

    ref = jax.block_until_ready(bottleneck_ref(x, params))

    # Exact path: f32 operands, HIGHEST-precision matmuls, forced multi-tile
    # grid (tile_rows=H*W -> one image per tile -> 2 grid steps) so the
    # two-phase BN / partial-stats reduction across tiles is exercised.
    out_f32 = jax.block_until_ready(
        bottleneck_pallas(x, params, compute_dtype=jnp.float32,
                          tile_rows=H * W))
    assert out_f32.shape == (N, Cout, H, W), out_f32.shape
    err = float(jnp.max(jnp.abs(out_f32 - ref)))
    if err > 5e-3:
        raise AssertionError(f"f32 mismatch vs reference, max abs err = {err}")

    # Fast path (default): bf16 activations/weights in HBM, f32 accumulation
    # and BN statistics, default (large) tile size.
    out_bf16 = jax.block_until_ready(bottleneck_pallas(x, params))
    assert out_bf16.shape == (N, Cout, H, W), out_bf16.shape
    rel = float(jnp.linalg.norm(out_bf16 - ref) / jnp.linalg.norm(ref))
    if rel > 5e-2:
        raise AssertionError(f"bf16 mismatch vs reference, rel L2 err = {rel}")

    print("KERNEL_OK")
</pallas_src>

<mosaic_0001>
module attributes {stable_mosaic.version = 11 : i64} {
  func.func @conv1_ds_kernel(%arg0: i32, %arg1: memref<64x16xf32, #tpu.memory_space<vmem>>, %arg2: memref<16x40xf32, #tpu.memory_space<vmem>>, %arg3: memref<64x32xf32, #tpu.memory_space<vmem>>, %arg4: memref<64x8xf32, #tpu.memory_space<vmem>>, %arg5: memref<1x2x40xf32, #tpu.memory_space<vmem>>) attributes {dimension_semantics = [#tpu.dimension_semantics<parallel>], iteration_bounds = array<i64: 2>, scalar_prefetch = 0 : i64, scratch_operands = 0 : i64, tpu.core_type = #tpu.core_type<tc>, window_params = [{transform_indices = @transform_0, window_bounds = array<i64: 64, 16>}, {pipeline_mode = #tpu.pipeline_mode<synchronous>, transform_indices = @transform_1, window_bounds = array<i64: 16, 40>}, {transform_indices = @transform_2, window_bounds = array<i64: 64, 32>}, {transform_indices = @transform_3, window_bounds = array<i64: 64, 8>}, {transform_indices = @transform_4, window_bounds = array<i64: 1, 2, 40>}]} {
    %c0 = arith.constant 0 : index
    %c0_0 = arith.constant 0 : index
    %0 = vector.load %arg1[%c0, %c0_0] : memref<64x16xf32, #tpu.memory_space<vmem>>, vector<64x16xf32>
    %c0_1 = arith.constant 0 : index
    %c0_2 = arith.constant 0 : index
    %1 = vector.load %arg2[%c0_1, %c0_2] : memref<16x40xf32, #tpu.memory_space<vmem>>, vector<16x40xf32>
    %cst = arith.constant dense<0.000000e+00> : vector<64x40xf32>
    %2 = tpu.matmul %0, %1, %cst {dimension_numbers = #tpu.dot_dimension_numbers<[1], [0], [0], [1], [0, 0, 1, 1], [], []>, precision = #tpu.contract_precision<fp32>} : vector<64x16xf32>, vector<16x40xf32>, vector<64x40xf32> -> vector<64x40xf32>
    %3 = vector.extract_strided_slice %2 {offsets = [0, 0], sizes = [64, 32], strides = [1, 1]} : vector<64x40xf32> to vector<64x32xf32>
    %c0_3 = arith.constant 0 : index
    %c0_4 = arith.constant 0 : index
    %4 = vector.load %arg3[%c0_3, %c0_4] : memref<64x32xf32, #tpu.memory_space<vmem>>, vector<64x32xf32>
    tpu.vector_store %arg3[%c0_3, %c0_4], %3 {strides = array<i32>} : memref<64x32xf32, #tpu.memory_space<vmem>>, vector<64x32xf32>,
    %5 = vector.extract_strided_slice %2 {offsets = [0, 32], sizes = [64, 8], strides = [1, 1]} : vector<64x40xf32> to vector<64x8xf32>
    %c0_5 = arith.constant 0 : index
    %c0_6 = arith.constant 0 : index
    %6 = vector.load %arg4[%c0_5, %c0_6] : memref<64x8xf32, #tpu.memory_space<vmem>>, vector<64x8xf32>
    tpu.vector_store %arg4[%c0_5, %c0_6], %5 {strides = array<i32>} : memref<64x8xf32, #tpu.memory_space<vmem>>, vector<64x8xf32>,
    %cst_7 = arith.constant dense<0.000000e+00> : vector<40xf32>
    %7 = vector.multi_reduction <add>, %2, %cst_7 [0] : vector<64x40xf32> to vector<40xf32>
    %8 = vector.shape_cast %7 : vector<40xf32> to vector<1x40xf32>
    %9 = arith.mulf %2, %2 : vector<64x40xf32>
    %cst_8 = arith.constant dense<0.000000e+00> : vector<40xf32>
    %10 = vector.multi_reduction <add>, %9, %cst_8 [0] : vector<64x40xf32> to vector<40xf32>
    %11 = vector.shape_cast %10 : vector<40xf32> to vector<1x40xf32>
    %12 = tpu.concatenate %8, %11 in 0 : vector<1x40xf32>, vector<1x40xf32> -> vector<2x40xf32>
    %13 = vector.shape_cast %12 : vector<2x40xf32> to vector<1x2x40xf32>
    %c0_9 = arith.constant 0 : index
    %c0_10 = arith.constant 0 : index
    %c0_11 = arith.constant 0 : index
    %14 = vector.load %arg5[%c0_9, %c0_10, %c0_11] : memref<1x2x40xf32, #tpu.memory_space<vmem>>, vector<1x2x40xf32>
    tpu.vector_store %arg5[%c0_9, %c0_10, %c0_11], %13 {strides = array<i32>} : memref<1x2x40xf32, #tpu.memory_space<vmem>>, vector<1x2x40xf32>,
    return
  }
  func.func @transform_0(%arg0: i32) -> (i32, i32) {
    %c0_i32 = arith.constant 0 : i32
    %c0_i32_0 = arith.constant 0 : i32
    return %arg0, %c0_i32 : i32, i32
  }
  func.func @transform_1(%arg0: i32) -> (i32, i32) {
    %c0_i32 = arith.constant 0 : i32
    %c0_i32_0 = arith.constant 0 : i32
    %c0_i32_1 = arith.constant 0 : i32
    return %c0_i32, %c0_i32_0 : i32, i32
  }
  func.func @transform_2(%arg0: i32) -> (i32, i32) {
    %c0_i32 = arith.constant 0 : i32
    %c0_i32_0 = arith.constant 0 : i32
    return %arg0, %c0_i32 : i32, i32
  }
  func.func @transform_3(%arg0: i32) -> (i32, i32) {
    %c0_i32 = arith.constant 0 : i32
    %c0_i32_0 = arith.constant 0 : i32
    return %arg0, %c0_i32 : i32, i32
  }
  func.func @transform_4(%arg0: i32) -> (i32, i32, i32) {
    %c0_i32 = arith.constant 0 : i32
    %c0_i32_0 = arith.constant 0 : i32
    %c0_i32_1 = arith.constant 0 : i32
    return %arg0, %c0_i32, %c0_i32_0 : i32, i32, i32
  }
}

</mosaic_0001>

<bundles_post_ra>
// kernel: tpu_custom_call.1
= control target key start
LH: loop header
LB: loop body
LE: loop exit
PB: predicated region body
PF: predicated region fallthrough
CT: control target
= control target key end

     0   :  { %10 = vsyncpa [#allocation3], 0  ;;  %s1907_s0 = inlined_call_operand.vmem [shape: f32[128,16], index: 0, kind: input, shape index: {}]   ;;  %s1908_s1 = inlined_call_operand.vmem [shape: f32[16,40], index: 1, kind: input, shape index: {}]   ;;  %s1909_s2 = inlined_call_operand.vmem [shape: f32[128,32], index: 2, kind: output, shape index: {0}]   ;;  %s1910_s3 = inlined_call_operand.vmem [shape: f32[128,8], index: 3, kind: output, shape index: {1}]   ;;  %s1911_s4 = inlined_call_operand.hbm [shape: f32[2,2,40], index: 4, kind: output, shape index: {2}]  }
   0x1   :  { %12 = vsyncpa [#allocation3 + $0x1], 0  ;;  %s1632_s15 = smov 0   ;;  %s1634_s16 = smov 0  }
   0x2   :  { %s1636_s17 = smov 0   ;;  %s1638_s18 = smov 0  }
   0x3 LB: > { %s1653_s19 = sadd.s32 4294967295, %s1603_s18   ;;  %s1266_s20 = sadd.s32 4294967294, %s1603_s18   ;;  %s1603_s18 = sphi %s1638_s18, %s1917_s18   ;;  %s1599_s17 = sphi %s1636_s17, %s1916_s17   ;;  %s1595_s16 = sphi %s1634_s16, %s1915_s16   ;;  %s1591_s15 = sphi %s1632_s15, %s1914_s15  }
   0x4   : > { %s1657_s21 = sadd.s32 1, %s1603_s18   ;;  %s124_s22 = sadd.s32 1, %s1599_s17 }
   0x5   : > { %s121_s23 = ssub.s32 %s1603_s18, %s1657_s21  ;;  %p134_p0 = scmp.ne.s32.totalorder %s1599_s17, %s1595_s16 }
   0x6   : > { %p122_p1 = scmp.eq.s32.totalorder %s121_s23, 0  ;;  %p135_p2 = scmp.eq.s32.totalorder %s1653_s19, 1 }
   0x7   : > { %p140_p3 = scmp.ne.s32.totalorder %s1595_s16, %s1591_s15  ;;  %p141_p4 = scmp.eq.s32.totalorder %s1266_s20, 1 }
   0x8   : > { %s1668_s24 = scalar_select %p122_p1, %s1599_s17, %s124_s22  }
   0x9   : > { %p1670_p5 = por %p135_p2, %p134_p0  ;;  %p1674_p6 = por %p141_p4, %p140_p3 }
   0xa   : > { %p1269_p7 = scmp.ge.s32.totalorder %s1603_s18, 1  ;;  %p171_p8 = scmp.lt.s32.totalorder %s1603_s18, 3 }
   0xc   : > { %p172_p9 = pnand %p1269_p7, %p171_p8 }
   0xd   : > { %v233_v0 = vld [vmem:[%s1908_s1] sm:$0xff] (!%p172_p9)  ;;  %v234_v1 = vld [vmem:[%s1908_s1 + $0x8] sm:$0xff] (!%p172_p9)  ;;  %s1271_s5 = sshll.u32 (!%p172_p9), %s1653_s19, 3  ;;  %vm235_vm0 = vcmask (!%p172_p9), 130048   ;;  %vm1020_vm1 = vcmask (!%p172_p9), 261120   ;;  %vm1070_vm2 = vcmask (!%p172_p9), 326656  }
   0xe   : > { %175 = sbr.rel (%p172_p9) target bundleno = 415 (0x19f), region = 28  ;;  %v261_v2 = vand.u32 (!%p172_p9), 4294901760, %v233_v0  ;;  %v264_v3 = vand.u32 (!%p172_p9), 4294901760, %v234_v1  ;;  %p208_p10 = scmp.lt.s32.totalorder (!%p172_p9), %s1271_s5, 15  ;;  %vm1121_vm3 = vcmask (!%p172_p9), 1040384   ;;  %vm1123_vm4 = vcmask (!%p172_p9), 320512  }
   0xf   : > { %s1605_s13 = smov (!%p172_p9), 96   ;;  %s204_s14 = sand.u32 (!%p172_p9), 1, %s1595_s16  }
  0x10   : > { %v1687_v4 = vpack.c.bf16 (!%p172_p9), %v264_v3, %v261_v2  ;;  %v1689_v5 = vsub.f32 (!%p172_p9), %v233_v0, %v261_v2  ;;  %v1691_v6 = vsub.f32 (!%p172_p9), %v234_v1, %v264_v3  ;;  %s1270_s20 = sshll.u32 (!%p172_p9), %s204_s14, 1  ;;  %s1278_s22 = sshll.u32 (!%p172_p9), %s1653_s19, 5 }
  0x11   : > { %s206_s23 = scalar_lea.vmem (!%p172_p9), [#allocation2], %s1270_s20  ;;  %s1853_s30 = scalar_lea.hbm (!%p172_p9), %s1911_s4, %s1278_s22 }
  0x12   : > { %1450 = vmatprep.subr.bf16.mxu0 (!%p172_p9), %v1687_v4  ;;  %1438 = vmatprep.subr.bf16.mxu1 (!%p172_p9), %v1687_v4  ;;  %v410_v7 = vand.u32 (!%p172_p9), 4294901760, %v1689_v5  ;;  %v417_v8 = vand.u32 (!%p172_p9), 4294901760, %v1691_v6  ;;  %v1445_v62 = vpack.c.bf16 (!%p172_p9), %v1691_v6, %v1689_v5  ;;  %s1157_s27 = sshll.u32 (!%p172_p9), %s206_s23, 4  ;;  %s1606_s7 = smov (!%p172_p9), [#allocation2]   ;;  %s1855_s27 = int_to_ptr.vmem [resolvable:$true] %s1157_s27 }
  0x13   : > { %1452 = vmatpush3.bf16.msra.mxu0 (!%p172_p9), %v1687_v4  ;;  %1440 = vmatpush3.bf16.msra.mxu1 (!%p172_p9), %v1687_v4  ;;  %s1541_s19 = scalar_lea.vmem (!%p172_p9), %s1855_s27, 32  ;;  %s1545_s8 = sshll.u32 (!%p172_p9), %s1606_s7, 4  ;;  %s1546_s8 = int_to_ptr.vmem [resolvable:$false] %s1545_s8 }
  0x14   : > { %v411_v11 = vsub.f32 (!%p172_p9), %v1689_v5, %v410_v7  ;;  %v418_v12 = vsub.f32 (!%p172_p9), %v1691_v6, %v417_v8  ;;  %v1453_v14 = vpack.c.bf16 (!%p172_p9), %v417_v8, %v410_v7  ;;  %p1542_p11 = scmp.ne.s32.totalorder (!%p172_p9), %s1855_s27, %s1541_s19  ;;  %p1548_p0 = scmp.lt.s32.totalorder (!%p172_p9), %s1855_s27, %s1546_s8 }
  0x15   : > { %s1919_s5 = smov (!%p208_p10, %s1271_s5), 15 }
  0x16   : > { %s1695_s6 = sshll.u32 %s1919_s5, 3  ;;  %v412_v23 = vand.u32 4294901760, %v411_v11  ;;  %v419_v24 = vand.u32 4294901760, %v418_v12  ;;  %1454 = vmatprep.subr.bf16.mxu0 %v1453_v14  ;;  %s1136_s5 = scalar_lea.sflag [#allocation3], %s204_s14 }
  0x17   : > { %s211_s9 = scalar_lea.vmem %s1907_s0, %s1695_s6  ;;  %s1806_s12 = scalar_lea.vmem %s1909_s2, %s1695_s6 }
  0x18   : > { %v225_v9 = vld [vmem:[%s211_s9] sm:$0xff]  ;;  %v226_v10 = vld [vmem:[%s211_s9 + $0x8] sm:$0xff]  ;;  %v227_v13 = vld [vmem:[%s211_s9 + $0x10] sm:$0xff]  ;;  %v1441_v32 = vpack.c.bf16 %v419_v24, %v412_v23  ;;  %p1543_p12 = pnand %p1542_p11, %p1670_p5 }
  0x19   : > { %v237_v15 = vsel %vm235_vm0, %v225_v9, 0  ;;  %v240_v16 = vsel %vm235_vm0, %v226_v10, 0  ;;  %v243_v17 = vsel %vm235_vm0, %v227_v13, 0  ;;  %v228_v18 = vld [vmem:[%s211_s9 + $0x18] sm:$0xff]  ;;  %v229_v19 = vld [vmem:[%s211_s9 + $0x20] sm:$0xff]  ;;  %v230_v20 = vld [vmem:[%s211_s9 + $0x28] sm:$0xff] }
  0x1a   : > { %v1710_v21 = vand.u32 4294901760, %v237_v15  ;;  %v1712_v22 = vand.u32 4294901760, %v240_v16  ;;  %v231_v25 = vld [vmem:[%s211_s9 + $0x30] sm:$0xff]  ;;  %v1714_v26 = vand.u32 4294901760, %v243_v17  ;;  %v246_v27 = vsel %vm235_vm0, %v228_v18, 0  ;;  %v232_v34 = vld [vmem:[%s211_s9 + $0x38] sm:$0xff]  ;;  %1442 = vmatprep.subr.bf16.mxu1 %v1441_v32  ;;  %p1544_p13 = pneg %p1543_p12 }
  0x1b   : > { %v249_v28 = vsel %vm235_vm0, %v229_v19, 0  ;;  %v252_v29 = vsel %vm235_vm0, %v230_v20, 0  ;;  %v1725_v33 = vand.u32 4294901760, %v246_v27  ;;  %v255_v38 = vsel %vm235_vm0, %v231_v25, 0  ;;  %s1547_s9 = scalar_lea.vmem %s1546_s8, 64 }
  0x1c   : > { %v1720_v30 = vsub.f32 %v237_v15, %v1710_v21  ;;  %v1723_v31 = vsub.f32 %v240_v16, %v1712_v22  ;;  %v1728_v35 = vsub.f32 %v243_v17, %v1714_v26  ;;  %v1730_v36 = vand.u32 4294901760, %v249_v28  ;;  %p1549_p1 = scmp.lt.s32.totalorder %s1547_s9, %s1541_s19 }
  0x1d   : > { %v1732_v37 = vand.u32 4294901760, %v252_v29  ;;  %v1738_v41 = vsub.f32 %v246_v27, %v1725_v33  ;;  %v1740_v42 = vand.u32 4294901760, %v255_v38  ;;  %v258_v46 = vsel %vm235_vm0, %v232_v34, 0 }
  0x1e   : > { %v329_v39 = vand.u32 4294901760, %v1720_v30  ;;  %v339_v40 = vand.u32 4294901760, %v1723_v31  ;;  %v349_v43 = vand.u32 4294901760, %v1728_v35  ;;  %v1744_v44 = vsub.f32 %v249_v28, %v1730_v36  ;;  %p1550_p2 = por %p1549_p1, %p1548_p0 }
  0x1f   : > { %v1747_v45 = vsub.f32 %v252_v29, %v1732_v37  ;;  %v359_v49 = vand.u32 4294901760, %v1738_v41  ;;  %v1754_v50 = vsub.f32 %v255_v38, %v1740_v42  ;;  %v1759_v54 = vand.u32 4294901760, %v258_v46 }
  0x20   : > { %1393 = vmatprep.mubr.f32.mxu0 %v329_v39  ;;  %v330_v47 = vsub.f32 %v1720_v30, %v329_v39  ;;  %v340_v48 = vsub.f32 %v1723_v31, %v339_v40  ;;  %v350_v51 = vsub.f32 %v1728_v35, %v349_v43  ;;  %v369_v52 = vand.u32 4294901760, %v1744_v44  ;;  %p1551_p3 = pnand %p1550_p2, %p1544_p13 }
  0x21   : > { %1394 = vmatmul.mubr.f32.vlgmr.msra.gmra.mrb[0].mxu0 %v339_v40  ;;  %v379_v53 = vand.u32 4294901760, %v1747_v45  ;;  %v360_v57 = vsub.f32 %v1738_v41, %v359_v49  ;;  %v389_v58 = vand.u32 4294901760, %v1754_v50  ;;  %v398_v61 = vsub.f32 %v258_v46, %v1759_v54 }
  0x22   : > { %v331_v55 = vand.u32 4294901760, %v330_v47  ;;  %1396 = vmatprep.mubr.f32.mxu0 %v349_v43  ;;  %v341_v56 = vand.u32 4294901760, %v340_v48  ;;  %1456 = vmatpush3.bf16.msra.mxu0 %v1453_v14  ;;  %v351_v59 = vand.u32 4294901760, %v350_v51  ;;  %v370_v60 = vsub.f32 %v1744_v44, %v369_v52 }
  0x23   : > { %1458 = vmatprep.subr.bf16.mxu0 %v1687_v4  ;;  %v361_v63 = vand.u32 4294901760, %v360_v57  ;;  %v380_v0 = vsub.f32 %v1747_v45, %v379_v53  ;;  %v399_v1 = vand.u32 4294901760, %v398_v61  ;;  %v390_v3 = vsub.f32 %v1754_v50, %v389_v58 }
  0x24   : > { %1345 = vmatprep.mubr.f32.mxu1 %v331_v55  ;;  %v371_v2 = vand.u32 4294901760, %v370_v60 }
  0x25   : > { %1346 = vmatmul.mubr.f32.vlgmr.msra.gmra.mrb[0].mxu1 %v341_v56  ;;  %1397 = vmatmul.mubr.f32.gmra.mrb[2].mxu0 %v359_v49  ;;  %v381_v7 = vand.u32 4294901760, %v380_v0  ;;  %v400_v5 = vsub.f32 %v398_v61, %v399_v1  ;;  %v391_v6 = vand.u32 4294901760, %v390_v3 }
  0x26   : > { %1444 = vmatpush3.bf16.msra.mxu1 %v1441_v32  ;;  %1348 = vmatprep.mubr.f32.mxu1 %v351_v59 }
  0x27   : > { %1399 = vmatprep.mubr.f32.mxu0 %v369_v52  ;;  %1446 = vmatprep.subr.bf16.mxu1 %v1445_v62  ;;  %v401_v8 = vand.u32 4294901760, %v400_v5 }
  0x29   : > { %1349 = vmatmul.mubr.f32.gmra.mrb[2].mxu1 %v361_v63  ;;  %1400 = vmatmul.mubr.f32.gmra.mrb[4].mxu0 %v379_v53 }
  0x2a   : > { %1351 = vmatprep.mubr.f32.mxu1 %v371_v2  ;;  %1402 = vmatprep.mubr.f32.mxu0 %v389_v58 }
  0x2d   : > { %1352 = vmatmul.mubr.f32.gmra.mrb[4].mxu1 %v381_v7  ;;  %1403 = vmatmul.mubr.f32.gmra.mrb[6].mxu0 %v399_v1 }
  0x2e   : > { %1354 = vmatprep.mubr.f32.mxu1 %v391_v6  ;;  %1409 = vmatprep.mubr.f32.mxu0 %v1710_v21 }
  0x31   : > { %1355 = vmatmul.mubr.f32.gmra.mrb[6].mxu1 %v401_v8  ;;  %1410 = vmatmul.mubr.f32.vlgmr.msra.gmra.mrb[0].mxu0 %v1712_v22 }
  0x32   : > { %1361 = vmatprep.mubr.f32.mxu1 %v1710_v21  ;;  %1412 = vmatprep.mubr.f32.mxu0 %v1714_v26 }
  0x33   : > { %1460 = vmatpush3.bf16.msra.mxu0 %v1687_v4 }
  0x35   : > { %1362 = vmatmul.mubr.f32.vlgmr.msra.gmra.mrb[0].mxu1 %v1712_v22  ;;  %1413 = vmatmul.mubr.f32.gmra.mrb[2].mxu0 %v1725_v33 }
  0x36   : > { %1448 = vmatpush3.bf16.msra.mxu1 %v1445_v62  ;;  %1364 = vmatprep.mubr.f32.mxu1 %v1714_v26 }
  0x37   : > { %1415 = vmatprep.mubr.f32.mxu0 %v1730_v36 }
  0x39   : > { %1365 = vmatmul.mubr.f32.gmra.mrb[2].mxu1 %v1725_v33  ;;  %1416 = vmatmul.mubr.f32.gmra.mrb[4].mxu0 %v1732_v37 }
  0x3a   : > { %1367 = vmatprep.mubr.f32.mxu1 %v1730_v36  ;;  %1418 = vmatprep.mubr.f32.mxu0 %v1740_v42 }
  0x3d   : > { %1368 = vmatmul.mubr.f32.gmra.mrb[4].mxu1 %v1732_v37  ;;  %1419 = vmatmul.mubr.f32.gmra.mrb[6].mxu0 %v1759_v54 }
  0x3e   : > { %1370 = vmatprep.mubr.f32.mxu1 %v1740_v42  ;;  %1425 = vmatprep.mubr.f32.mxu0 %v1710_v21 }
  0x41   : > { %1371 = vmatmul.mubr.f32.gmra.mrb[6].mxu1 %v1759_v54  ;;  %1426 = vmatmul.mubr.f32.vlgmr.msra.gmra.mrb[0].mxu0 %v1712_v22 }
  0x42   : > { %1377 = vmatprep.mubr.f32.mxu1 %v1720_v30  ;;  %1428 = vmatprep.mubr.f32.mxu0 %v1714_v26 }
  0x45   : > { %1378 = vmatmul.mubr.f32.vlgmr.msra.gmra.mrb[0].mxu1 %v1723_v31  ;;  %1429 = vmatmul.mubr.f32.gmra.mrb[2].mxu0 %v1725_v33 }
  0x46   : > { %1380 = vmatprep.mubr.f32.mxu1 %v1728_v35  ;;  %1431 = vmatprep.mubr.f32.mxu0 %v1730_v36 }
  0x49   : > { %1381 = vmatmul.mubr.f32.gmra.mrb[2].mxu1 %v1738_v41  ;;  %1432 = vmatmul.mubr.f32.gmra.mrb[4].mxu0 %v1732_v37 }
  0x4a   : > { %1383 = vmatprep.mubr.f32.mxu1 %v1744_v44  ;;  %1434 = vmatprep.mubr.f32.mxu0 %v1740_v42 }
  0x4d   : > { %1384 = vmatmul.mubr.f32.gmra.mrb[4].mxu1 %v1747_v45  ;;  %1435 = vmatmul.mubr.f32.gmra.mrb[6].mxu0 %v1759_v54 }
  0x4e   : > { %1386 = vmatprep.mubr.f32.mxu1 %v1754_v50 }
  0x51   : > { %1387 = vmatmul.mubr.f32.gmra.mrb[6].mxu1 %v398_v61 }
 0x114   : > { %v1427_v4 = vpop.f32.mrb[0].mxu0 }
 0x115   : > { %v974_v9 = vpop.f32.mrb[1].mxu0 }
 0x118   : > { %v1379_v10 = vpop.f32.mrb[0].mxu1  ;;  %v1430_v11 = vpop.f32.mrb[2].mxu0 }
 0x119   : > { %v1461_v12 = vadd.f32 %v1427_v4, %v1379_v10  ;;  %v602_v13 = vpop.f32.mrb[1].mxu1  ;;  %v986_v14 = vpop.f32.mrb[3].mxu0 }
 0x11a   : > { %v1462_v15 = vadd.f32 %v974_v9, %v602_v13 }
 0x11b   : > { %1022 = vst.msk [vmem:[%s1806_s12 + $0x8] sm:$0xff] %vm1020_vm1, %v1461_v12  ;;  %v1072_v16 = vsel %vm1070_vm2, %v1461_v12, 0.0  ;;  %v1093_v17 = vmul.f32 %v1461_v12, %v1461_v12  ;;  %1039 = vrot.lane.b32.xlu0 %v1461_v12, %s1605_s13 }
 0x11c   : > { %1021 = vst.msk [vmem:[%s1806_s12] sm:$0xff] %vm1020_vm1, %v1462_v15  ;;  %v1071_v18 = vsel %vm1070_vm2, %v1462_v15, 0.0  ;;  %v1092_v19 = vmul.f32 %v1462_v15, %v1462_v15  ;;  %v1382_v20 = vpop.f32.mrb[2].mxu1  ;;  %v1433_v21 = vpop.f32.mrb[4].mxu0 }
 0x11d   : > { %v1101_v22 = vsel %vm1070_vm2, %v1093_v17, 0.0  ;;  %v1073_v23 = vadd.f32 %v1072_v16, %v1071_v18  ;;  %v1463_v24 = vadd.f32 %v1430_v11, %v1382_v20  ;;  %v616_v25 = vpop.f32.mrb[3].mxu1  ;;  %v998_v26 = vpop.f32.mrb[5].mxu0 }
 0x11e   : > { %v1100_v27 = vsel %vm1070_vm2, %v1092_v19, 0.0  ;;  %v1464_v28 = vadd.f32 %v986_v14, %v616_v25 }
 0x11f   : > { %v1102_v29 = vadd.f32 %v1101_v22, %v1100_v27  ;;  %1024 = vst.msk [vmem:[%s1806_s12 + $0x18] sm:$0xff] %vm1020_vm1, %v1463_v24  ;;  %1037 = vrot.lane.b32.xlu0 %v1462_v15, %s1605_s13  ;;  %1043 = vrot.lane.b32.xlu1 %v1463_v24, %s1605_s13  ;;  %v1095_v30 = vmul.f32 %v1463_v24, %v1463_v24  ;;  %v1076_v39 = vsel %vm1070_vm2, %v1463_v24, 0.0 }
 0x120   : > { %1023 = vst.msk [vmem:[%s1806_s12 + $0x10] sm:$0xff] %vm1020_vm1, %v1464_v28  ;;  %v1074_v31 = vsel %vm1070_vm2, %v1464_v28, 0.0  ;;  %v1094_v32 = vmul.f32 %v1464_v28, %v1464_v28  ;;  %v1385_v33 = vpop.f32.mrb[4].mxu1  ;;  %v1436_v34 = vpop.f32.mrb[6].mxu0 }
 0x121   : > { %v1075_v35 = vadd.f32 %v1074_v31, %v1073_v23  ;;  %v1465_v36 = vadd.f32 %v1433_v21, %v1385_v33  ;;  %v630_v37 = vpop.f32.mrb[5].mxu1  ;;  %v1010_v38 = vpop.f32.mrb[7].mxu0  ;;  %v1105_v44 = vsel %vm1070_vm2, %v1095_v30, 0.0 }
 0x122   : > { %v1103_v40 = vsel %vm1070_vm2, %v1094_v32, 0.0  ;;  %v1466_v41 = vadd.f32 %v998_v26, %v630_v37 }
 0x123   : > { %v1104_v42 = vadd.f32 %v1103_v40, %v1102_v29  ;;  %1026 = vst.msk [vmem:[%s1806_s12 + $0x28] sm:$0xff] %vm1020_vm1, %v1465_v36  ;;  %v1077_v43 = vadd.f32 %v1076_v39, %v1075_v35  ;;  %1041 = vrot.lane.b32.xlu1 %v1464_v28, %s1605_s13  ;;  %v1097_v45 = vmul.f32 %v1465_v36, %v1465_v36  ;;  %v1080_v53 = vsel %vm1070_vm2, %v1465_v36, 0.0 }
 0x124   : > { %1025 = vst.msk [vmem:[%s1806_s12 + $0x20] sm:$0xff] %vm1020_vm1, %v1466_v41  ;;  %v1078_v46 = vsel %vm1070_vm2, %v1466_v41, 0.0  ;;  %v1096_v47 = vmul.f32 %v1466_v41, %v1466_v41  ;;  %1045 = vrot.lane.b32.xlu0 %v1466_v41, %s1605_s13  ;;  %v1388_v48 = vpop.f32.mrb[6].mxu1 }
 0x125   : > { %v1079_v49 = vadd.f32 %v1078_v46, %v1077_v43  ;;  %v1106_v50 = vadd.f32 %v1105_v44, %v1104_v42  ;;  %v1467_v51 = vadd.f32 %v1436_v34, %v1388_v48  ;;  %v644_v52 = vpop.f32.mrb[7].mxu1  ;;  %v1109_v58 = vsel %vm1070_vm2, %v1097_v45, 0.0 }
 0x126   : > { %v1107_v54 = vsel %vm1070_vm2, %v1096_v47, 0.0  ;;  %v1468_v55 = vadd.f32 %v1010_v38, %v644_v52 }
 0x127   : > { %v1108_v56 = vadd.f32 %v1107_v54, %v1106_v50  ;;  %1028 = vst.msk [vmem:[%s1806_s12 + $0x38] sm:$0xff] %vm1020_vm1, %v1467_v51  ;;  %v1081_v57 = vadd.f32 %v1080_v53, %v1079_v49  ;;  %1047 = vrot.lane.b32.xlu1 %v1465_v36, %s1605_s13  ;;  %v1099_v59 = vmul.f32 %v1467_v51, %v1467_v51  ;;  %v1084_v0 = vsel %vm1070_vm2, %v1467_v51, 0.0 }
 0x128   : > { %1027 = vst.msk [vmem:[%s1806_s12 + $0x30] sm:$0xff] %vm1020_vm1, %v1468_v55  ;;  %v1082_v60 = vsel %vm1070_vm2, %v1468_v55, 0.0  ;;  %v1098_v61 = vmul.f32 %v1468_v55, %v1468_v55  ;;  %1049 = vrot.lane.b32.xlu0 %v1468_v55, %s1605_s13 }
 0x129   : > { %v1083_v62 = vadd.f32 %v1082_v60, %v1081_v57  ;;  %v1110_v63 = vadd.f32 %v1109_v58, %v1108_v56  ;;  %v1113_v7 = vsel %vm1070_vm2, %v1099_v59, 0.0 }
 0x12a   : > { %v1111_v1 = vsel %vm1070_vm2, %v1098_v61, 0.0 }
 0x12b   : > { %v1085_v2 = vadd.f32 %v1084_v0, %v1083_v62  ;;  %v1112_v3 = vadd.f32 %v1111_v1, %v1110_v63  ;;  %1051 = vrot.lane.b32.xlu1 %v1467_v51, %s1605_s13 }
 0x12d   : > { %v1086_v5 = vrot.slane %v1085_v2, 4  ;;  %v1114_v6 = vadd.f32 %v1113_v7, %v1112_v3 }
 0x12f   : > { %v1087_v8 = vadd.f32 %v1086_v5, %v1085_v2  ;;  %v1115_v4 = vrot.slane %v1114_v6, 4 }
 0x131   : > { %v1088_v9 = vrot.slane %v1087_v8, 2  ;;  %v1116_v10 = vadd.f32 %v1115_v4, %v1114_v6 }
 0x133   : > { %v1089_v11 = vadd.f32 %v1088_v9, %v1087_v8  ;;  %v1117_v12 = vrot.slane %v1116_v10, 2 }
 0x135   : > { %v1090_v13 = vrot.slane %v1089_v11, 1  ;;  %v1118_v14 = vadd.f32 %v1117_v12, %v1116_v10 }
 0x137   : > { %v1119_v15 = vrot.slane %v1118_v14, 1  ;;  %v1091_v16 = vadd.f32 %v1090_v13, %v1089_v11 }
 0x139   : > { %v1120_v17 = vadd.f32 %v1119_v15, %v1118_v14 }
 0x13b   : > { %v1122_v18 = vsel %vm1121_vm3, %v1091_v16, %v1120_v17 }
 0x13c   : > { %1124 = vst.msk [vmem:[%s206_s23] sm:$0x3] %vm1123_vm4, %v1122_v18 }
 0x13d   : > { %1554 = shalt.err (!%p1551_p3)
}
 0x13e   : > { %s1555_s10 = scalar_lea.hbm %s1853_s30, 32  ;;  %s1559_s13 = scalar_lea.hbm %s1911_s4, 64 }
 0x13f   : > { %p1556_p4 = scmp.ne.s32.totalorder %s1853_s30, %s1555_s10  ;;  %p1560_p9 = scmp.lt.u32.totalorder %s1853_s30, %s1911_s4 }
 0x140   : > { %p1561_p10 = scmp.lt.u32.totalorder %s1559_s13, %s1555_s10  ;;  %p1563_p12 = scmp.lt.u32.totalorder %s1555_s10, %s1853_s30 }
 0x141   : > { %p1557_p7 = pnand %p1556_p4, %p1670_p5 }
 0x142   : > { %p1562_p11 = por %p1561_p10, %p1560_p9 }
 0x143   : > { %p1558_p8 = pneg %p1557_p7 }
 0x144   : > { %p1564_p13 = por %p1563_p12, %p1562_p11 }
 0x146   : > { %p1565_p0 = pnand %p1564_p13, %p1558_p8 }
 0x148   : > { %1568 = shalt.err (!%p1565_p0)
}
 0x149   : > { %1501 = dma.vmem_to_hbm [thread:$0]  (%p1670_p5), %s1855_s27, 32, %s1853_s30, %s1136_s5   ;;  %vm1061_vm5 = vcmask 64512  }
 0x14a   : > { %s223_s28 = scalar_lea.vmem %s1910_s3, %s1695_s6 }
 0x18d   : > { %v1040_v19 = vpop.permute.xlu0 %1039 }
 0x18e   : > { %1063 = vst.msk [vmem:[%s223_s28 + $0x8] sm:$0xff] %vm1061_vm5, %v1040_v19 }
 0x191   : > { %v1038_v20 = vpop.permute.xlu0 %1037  ;;  %v1044_v21 = vpop.permute.xlu1 %1043 }
 0x192   : > { %1062 = vst.msk [vmem:[%s223_s28] sm:$0xff] %vm1061_vm5, %v1038_v20  ;;  %1065 = vst.msk [vmem:[%s223_s28 + $0x18] sm:$0xff] %vm1061_vm5, %v1044_v21 }
 0x195   : > { %v1042_v22 = vpop.permute.xlu1 %1041 }
 0x196   : > { %1064 = vst.msk [vmem:[%s223_s28 + $0x10] sm:$0xff] %vm1061_vm5, %v1042_v22  ;;  %v1046_v23 = vpop.permute.xlu0 %1045 }
 0x197   : > { %1066 = vst.msk [vmem:[%s223_s28 + $0x20] sm:$0xff] %vm1061_vm5, %v1046_v23 }
 0x199   : > { %v1048_v24 = vpop.permute.xlu1 %1047 }
 0x19a   : > { %1067 = vst.msk [vmem:[%s223_s28 + $0x28] sm:$0xff] %vm1061_vm5, %v1048_v24  ;;  %v1050_v25 = vpop.permute.xlu0 %1049 }
 0x19b   : > { %1068 = vst.msk [vmem:[%s223_s28 + $0x30] sm:$0xff] %vm1061_vm5, %v1050_v25 }
 0x19d   : > { %v1052_v26 = vpop.permute.xlu1 %1051 }
 0x19e   : > { %1069 = vst.msk [vmem:[%s223_s28 + $0x38] sm:$0xff] %vm1061_vm5, %v1052_v26 }
 0x19f PF: > { %p1507_p5 = scmp.ge.s32.totalorder %s1603_s18, 2  ;;  %s1185_s25 = sand.u32 1, %s1591_s15  }
 0x1a0   : > { %s1186_s6 = scalar_lea.sflag [#allocation3], %s1185_s25 }
 0x1a1   : > { %p1504_p1 = pnand %p1507_p5, %p1674_p6 }
 0x1a3   : > { %1586 = dma.done.wait (!%p1504_p1), %s1186_s6, 32  }
 0x1a4   : > { %1588 = vsyncadd (!%p1504_p1), %s1186_s6, 4294967264  ;;  %p15_p2 = scmp.ge.s32.totalorder %s1657_s21, 4   ;;  %s1914_s15 = smov %s1595_s16 }
 0x1a5   : > { %s1915_s16 = smov %s1599_s17  ;;  %s1916_s17 = smov %s1668_s24 }
 0x1a6   : > { %s1917_s18 = smov %s1657_s21  ;;  %17 = sbr.rel (!%p15_p2) target bundleno = 3 (0x3), region = 87 }
 0x1ad   :  { %1191 = vsyncpa [#allocation3], 1 }
 0x1ae   :  { %1193 = vsyncpa [#allocation3 + $0x1], 1 }

</bundles_post_ra>
